<compile_context>
chip_gen: v5e
topology: v5e:2x2
jax: 0.10.0
libtpu: 0.0.40
codegen_flags: <defaults>
</compile_context>

<pallas_src>
import jax
import jax.numpy as jnp
from jax import lax
from jax.experimental import pallas as pl
from jax.experimental.pallas import tpu as pltpu

# ----------------------------- configuration -------------------------------
X_DIM = 4
Z_DIM = 8
WIDTH = 32          # q_z / p_x_z / p_t_z / p_y_zt widths (all *_nn_layers = 2)
X_MODE = [0, 2, 3, 0]
N_X_EST = sum(1 if m in (0, 2) else m for m in X_MODE)   # = 6
Y_LOSS_TYPE = 2     # -> y heads output [mu, log_std]
BATCH = 8

MLP_SIZES = {
    "encoder": [X_DIM, WIDTH, WIDTH, 2 * Z_DIM],
    "x_nn":    [Z_DIM, WIDTH, WIDTH, 2 * N_X_EST],
    "t_nn":    [Z_DIM, WIDTH, WIDTH, 1],
    "y0_nn":   [Z_DIM, WIDTH, WIDTH, Y_LOSS_TYPE],
    "y1_nn":   [Z_DIM, WIDTH, WIDTH, Y_LOSS_TYPE],
}
MLP_ORDER = ["encoder", "x_nn", "t_nn", "y0_nn", "y1_nn"]

# --------------------- packed slab layouts (all static) ----------------------
LANES = 128
IN_W = 16           # input slab:  cols 0:4 = x | col 4 = t | cols 8:16 = eps
OUT_W = LANES       # output slab: 0:8 z_mu | 8:16 z_std | 16:22 x_pred
                    #              22:28 x_std | 28 t_pred | 29 y_mu | 30 y_std

# weight-slab row bands (all 8-aligned)
ENC_W0_R, ENC_W1_R, ENC_W2_R = 0, 8, 40
ENC_B0_R, ENC_B1_R, ENC_B2_R = 72, 80, 88
DEC_W0_R, DEC_W1_R, DEC_W2_R = 96, 104, 232
DEC_B0_R, DEC_B1_R, DEC_B2_R = 360, 368, 376
SLAB_ROWS = 384

# fused decoder output lanes
XP_C, XS_C, TP_C, Y0_C, Y1_C = 16, 22, 28, 29, 31


# ------------------------------- the kernel --------------------------------
def proxy_vae_kernel(inp_ref, w_ref, out_ref):
    f32 = jnp.float32
    inp = inp_ref[...]                       # [TB, 16]
    xp = inp[:, 0:8]                         # [x0..x3, t, 0, 0, 0]
    eps = inp[:, 8:16]                       # [TB, 8]
    t = inp[:, 4:5]                          # [TB, 1]

    # ---------------- encoder q(z|x): Linear-ReLU-Linear-ReLU-Linear ---------
    # Layer-0 weight band has zero rows for the t / pad lanes of xp.
    h = jnp.dot(xp, w_ref[ENC_W0_R:ENC_W0_R + 8, 0:WIDTH],
                preferred_element_type=f32) + w_ref[ENC_B0_R:ENC_B0_R + 1, 0:WIDTH]
    h = jnp.maximum(h, 0.0)
    h = jnp.dot(h, w_ref[ENC_W1_R:ENC_W1_R + WIDTH, 0:WIDTH],
                preferred_element_type=f32) + w_ref[ENC_B1_R:ENC_B1_R + 1, 0:WIDTH]
    h = jnp.maximum(h, 0.0)
    enc = jnp.dot(h, w_ref[ENC_W2_R:ENC_W2_R + WIDTH, :],
                  preferred_element_type=f32) + w_ref[ENC_B2_R:ENC_B2_R + 1, :]
    # enc: [TB,128]; lanes 0:8 = z_mu, 8:16 = z_log_std, 16:128 = exactly 0

    lane = lax.broadcasted_iota(jnp.int32, enc.shape, 1)
    enc = jnp.where((lane >= Z_DIM) & (lane < 2 * Z_DIM), jnp.exp(enc), enc)

    # reparameterize z = mu + eps * std
    z = enc[:, 0:Z_DIM] + eps * enc[:, Z_DIM:2 * Z_DIM]          # [TB, 8]

    # -------- fused decoder: x_nn | t_nn | y0_nn | y1_nn (block-diagonal) ----
    h = jnp.dot(z, w_ref[DEC_W0_R:DEC_W0_R + Z_DIM, :],
                preferred_element_type=f32) + w_ref[DEC_B0_R:DEC_B0_R + 1, :]
    h = jnp.maximum(h, 0.0)
    h = jnp.dot(h, w_ref[DEC_W1_R:DEC_W1_R + 128, :],
                preferred_element_type=f32) + w_ref[DEC_B1_R:DEC_B1_R + 1, :]
    h = jnp.maximum(h, 0.0)
    dec = jnp.dot(h, w_ref[DEC_W2_R:DEC_W2_R + 128, :],
                  preferred_element_type=f32) + w_ref[DEC_B2_R:DEC_B2_R + 1, :]
    # dec lanes: 16:22 x_pred | 22:28 x_log_std | 28 t_pred
    #            29 y0_mu | 30 y0_log_std | 31 y1_mu | 32 y1_log_std | rest 0

    exp_mask = (((lane >= XS_C) & (lane < XS_C + N_X_EST))
                | (lane == Y0_C + 1) | (lane == Y1_C + 1))
    dec = jnp.where(exp_mask, jnp.exp(dec), dec)

    # t-gated mixing of the two y heads -> lanes 29 (mu) / 30 (std)
    y_mu = dec[:, Y1_C:Y1_C + 1] * t + dec[:, Y0_C:Y0_C + 1] * (1.0 - t)
    y_std = dec[:, Y1_C + 1:Y1_C + 2] * t + dec[:, Y0_C + 1:Y0_C + 2] * (1.0 - t)
    y_mu_b = jnp.broadcast_to(y_mu, dec.shape)
    y_std_b = jnp.broadcast_to(y_std, dec.shape)
    dec = jnp.where(lane == Y0_C, y_mu_b,
                    jnp.where(lane == Y0_C + 1, y_std_b,
                              jnp.where(lane > Y0_C + 1, 0.0, dec)))

    # Encoder lanes (0:16) and decoder lanes (16:31) are disjoint; pad lanes are
    # zero in both.  Single full-width, lane-dense store.
    out_ref[...] = enc + dec


# ------------------------------- wrapper ------------------------------------
def pack_inputs(x, t, eps):
    b = x.shape[0]
    inp = jnp.zeros((b, IN_W), jnp.float32)
    inp = inp.at[:, 0:X_DIM].set(x)
    inp = inp.at[:, X_DIM:X_DIM + 1].set(t)
    inp = inp.at[:, 8:8 + Z_DIM].set(eps)
    return inp


def proxy_vae_forward(x, t, eps, wslab):
    b = x.shape[0]
    tb = b if b <= 512 else 512
    assert b % tb == 0 and tb % 8 == 0, "batch must be a multiple of 8"
    inp = pack_inputs(x, t, eps)
    out = pl.pallas_call(
        proxy_vae_kernel,
        out_shape=jax.ShapeDtypeStruct((b, OUT_W), jnp.float32),
        grid=(b // tb,),
        in_specs=[pl.BlockSpec((tb, IN_W), lambda i: (i, 0)),
                  pl.BlockSpec((SLAB_ROWS, LANES), lambda i: (0, 0))],
        out_specs=pl.BlockSpec((tb, OUT_W), lambda i: (i, 0)),
        compiler_params=pltpu.CompilerParams(
            dimension_semantics=("parallel",)),   # batch axis -> v7x megacore
    )(inp, wslab)
    z_mu = out[:, 0:Z_DIM]
    z_std = out[:, Z_DIM:2 * Z_DIM]
    x_pred = out[:, XP_C:XP_C + N_X_EST]
    x_std = out[:, XS_C:XS_C + N_X_EST]
    t_pred = out[:, TP_C:TP_C + 1]
    y_mu = out[:, Y0_C:Y0_C + 1]
    y_std = out[:, Y0_C + 1:Y0_C + 2]
    return z_mu, z_std, x_pred, x_std, t_pred, y_mu, y_std


# --------------------------- deterministic init ------------------------------
def init_params(key):
    """Weights stored as [in, out]; biases as [1, out]."""
    params = []
    for name in MLP_ORDER:
        sizes = MLP_SIZES[name]
        for fan_in, fan_out in zip(sizes[:-1], sizes[1:]):
            key, kw, kb = jax.random.split(key, 3)
            scale = 1.0 / jnp.sqrt(jnp.float32(fan_in))
            params.append(jax.random.normal(kw, (fan_in, fan_out), jnp.float32) * scale)
            params.append(jax.random.normal(kb, (1, fan_out), jnp.float32) * 0.01)
    return params


def pack_weight_slab(params):
    """Pack the 30 weight/bias tensors into one [384,128] f32 slab."""
    w = jnp.zeros((SLAB_ROWS, LANES), jnp.float32)

    def layer(mlp_idx, layer_idx):
        base = mlp_idx * 6 + layer_idx * 2
        return params[base], params[base + 1].reshape(-1)

    # --- encoder (input is x padded to 8 lanes; extra weight rows stay zero) ---
    W0, b0 = layer(0, 0)
    W1, b1 = layer(0, 1)
    W2, b2 = layer(0, 2)
    w = w.at[ENC_W0_R:ENC_W0_R + X_DIM, 0:WIDTH].set(W0)
    w = w.at[ENC_W1_R:ENC_W1_R + WIDTH, 0:WIDTH].set(W1)
    w = w.at[ENC_W2_R:ENC_W2_R + WIDTH, 0:2 * Z_DIM].set(W2)
    w = w.at[ENC_B0_R, 0:WIDTH].set(b0)
    w = w.at[ENC_B1_R, 0:WIDTH].set(b1)
    w = w.at[ENC_B2_R, 0:2 * Z_DIM].set(b2)

    # --- fused decoder heads: x_nn, t_nn, y0_nn, y1_nn -> hidden blocks 0..3 ---
    head_out_col = {1: XP_C, 2: TP_C, 3: Y0_C, 4: Y1_C}
    for h_i, mlp_i in enumerate((1, 2, 3, 4)):
        W0, b0 = layer(mlp_i, 0)
        W1, b1 = layer(mlp_i, 1)
        W2, b2 = layer(mlp_i, 2)
        c0 = WIDTH * h_i
        oc = head_out_col[mlp_i]
        ow = W2.shape[1]
        # layer 0: concatenated along output lanes
        w = w.at[DEC_W0_R:DEC_W0_R + Z_DIM, c0:c0 + WIDTH].set(W0)
        w = w.at[DEC_B0_R, c0:c0 + WIDTH].set(b0)
        # layer 1: block-diagonal (off-diagonal blocks remain exact zeros)
        w = w.at[DEC_W1_R + c0:DEC_W1_R + c0 + WIDTH, c0:c0 + WIDTH].set(W1)
        w = w.at[DEC_B1_R, c0:c0 + WIDTH].set(b1)
        # layer 2: scatter each head's outputs to fixed lanes
        w = w.at[DEC_W2_R + c0:DEC_W2_R + c0 + WIDTH, oc:oc + ow].set(W2)
        w = w.at[DEC_B2_R, oc:oc + ow].set(b2)
    return w


# ------------------------------ JAX reference --------------------------------
def reference_forward(x, t, eps, params):
    def mlp3(h, base):
        h = jnp.maximum(h @ params[base + 0] + params[base + 1], 0.0)
        h = jnp.maximum(h @ params[base + 2] + params[base + 3], 0.0)
        return h @ params[base + 4] + params[base + 5]

    enc = mlp3(x, 0)
    z_mu, z_std = enc[:, :Z_DIM], jnp.exp(enc[:, Z_DIM:])
    z = eps * z_std + z_mu
    xr = mlp3(z, 6)
    x_pred, x_std = xr[:, :N_X_EST], jnp.exp(xr[:, N_X_EST:])
    t_pred = mlp3(z, 12)
    y0, y1 = mlp3(z, 18), mlp3(z, 24)
    y_mu = y1[:, :1] * t + y0[:, :1] * (1.0 - t)
    y_std = jnp.exp(y1[:, 1:]) * t + jnp.exp(y0[:, 1:]) * (1.0 - t)
    return z_mu, z_std, x_pred, x_std, t_pred, y_mu, y_std


# ---------------------------------- main -------------------------------------
if __name__ == "__main__":
    key = jax.random.PRNGKey(0)
    kp, kx, kt, ke = jax.random.split(key, 4)

    params = init_params(kp)
    wslab = pack_weight_slab(params)

    x = jax.random.normal(kx, (BATCH, X_DIM), jnp.float32)
    t = (jax.random.uniform(kt, (BATCH, 1)) < 0.5).astype(jnp.float32)
    eps = jax.random.normal(ke, (BATCH, Z_DIM), jnp.float32)  # torch.randn_like(std)

    outs = proxy_vae_forward(x, t, eps, wslab)
    outs = jax.block_until_ready(outs)

    refs = reference_forward(x, t, eps, params)
    for o, r in zip(outs, refs):
        assert o.shape == r.shape and o.dtype == r.dtype
        assert jnp.allclose(o, r, atol=1e-4, rtol=1e-3), "mismatch vs JAX reference"

    print("KERNEL_OK")
</pallas_src>

<mosaic_0001>
module attributes {stable_mosaic.version = 11 : i64} {
  func.func @proxy_vae_kernel(%arg0: i32, %arg1: memref<8x16xf32, #tpu.memory_space<vmem>>, %arg2: memref<384x128xf32, #tpu.memory_space<vmem>>, %arg3: memref<8x128xf32, #tpu.memory_space<vmem>>) attributes {dimension_semantics = [#tpu.dimension_semantics<parallel>], iteration_bounds = array<i64: 1>, scalar_prefetch = 0 : i64, scratch_operands = 0 : i64, tpu.core_type = #tpu.core_type<tc>, window_params = [{transform_indices = @transform_0, window_bounds = array<i64: 8, 16>}, {pipeline_mode = #tpu.pipeline_mode<synchronous>, transform_indices = @transform_1, window_bounds = array<i64: 384, 128>}, {transform_indices = @transform_2, window_bounds = array<i64: 8, 128>}]} {
    %c0 = arith.constant 0 : index
    %c0_0 = arith.constant 0 : index
    %0 = vector.load %arg1[%c0, %c0_0] : memref<8x16xf32, #tpu.memory_space<vmem>>, vector<8x16xf32>
    %1 = vector.extract_strided_slice %0 {offsets = [0, 0], sizes = [8, 8], strides = [1, 1]} : vector<8x16xf32> to vector<8x8xf32>
    %2 = vector.extract_strided_slice %0 {offsets = [0, 8], sizes = [8, 8], strides = [1, 1]} : vector<8x16xf32> to vector<8x8xf32>
    %3 = vector.extract_strided_slice %0 {offsets = [0, 4], sizes = [8, 1], strides = [1, 1]} : vector<8x16xf32> to vector<8x1xf32>
    %c0_1 = arith.constant 0 : index
    %c0_2 = arith.constant 0 : index
    %4 = vector.load %arg2[%c0_1, %c0_2] : memref<384x128xf32, #tpu.memory_space<vmem>>, vector<8x32xf32>
    %cst = arith.constant dense<0.000000e+00> : vector<8x32xf32>
    %5 = tpu.matmul %1, %4, %cst {dimension_numbers = #tpu.dot_dimension_numbers<[1], [0], [0], [1], [0, 0, 1, 1], [], []>} : vector<8x8xf32>, vector<8x32xf32>, vector<8x32xf32> -> vector<8x32xf32>
    %c72 = arith.constant 72 : index
    %c0_3 = arith.constant 0 : index
    %6 = vector.load %arg2[%c72, %c0_3] : memref<384x128xf32, #tpu.memory_space<vmem>>, vector<1x32xf32>
    %7 = vector.broadcast %6 : vector<1x32xf32> to vector<8x32xf32>
    %8 = arith.addf %5, %7 : vector<8x32xf32>
    %cst_4 = arith.constant 0.000000e+00 : f32
    %9 = vector.broadcast %cst_4 : f32 to vector<8x32xf32>
    %10 = arith.maximumf %8, %9 : vector<8x32xf32>
    %c8 = arith.constant 8 : index
    %c0_5 = arith.constant 0 : index
    %11 = vector.load %arg2[%c8, %c0_5] : memref<384x128xf32, #tpu.memory_space<vmem>>, vector<32x32xf32>
    %cst_6 = arith.constant dense<0.000000e+00> : vector<8x32xf32>
    %12 = tpu.matmul %10, %11, %cst_6 {dimension_numbers = #tpu.dot_dimension_numbers<[1], [0], [0], [1], [0, 0, 1, 1], [], []>} : vector<8x32xf32>, vector<32x32xf32>, vector<8x32xf32> -> vector<8x32xf32>
    %c80 = arith.constant 80 : index
    %c0_7 = arith.constant 0 : index
    %13 = vector.load %arg2[%c80, %c0_7] : memref<384x128xf32, #tpu.memory_space<vmem>>, vector<1x32xf32>
    %14 = vector.broadcast %13 : vector<1x32xf32> to vector<8x32xf32>
    %15 = arith.addf %12, %14 : vector<8x32xf32>
    %cst_8 = arith.constant 0.000000e+00 : f32
    %16 = vector.broadcast %cst_8 : f32 to vector<8x32xf32>
    %17 = arith.maximumf %15, %16 : vector<8x32xf32>
    %c40 = arith.constant 40 : index
    %c0_9 = arith.constant 0 : index
    %18 = vector.load %arg2[%c40, %c0_9] : memref<384x128xf32, #tpu.memory_space<vmem>>, vector<32x128xf32>
    %cst_10 = arith.constant dense<0.000000e+00> : vector<8x128xf32>
    %19 = tpu.matmul %17, %18, %cst_10 {dimension_numbers = #tpu.dot_dimension_numbers<[1], [0], [0], [1], [0, 0, 1, 1], [], []>} : vector<8x32xf32>, vector<32x128xf32>, vector<8x128xf32> -> vector<8x128xf32>
    %c88 = arith.constant 88 : index
    %c0_11 = arith.constant 0 : index
    %20 = vector.load %arg2[%c88, %c0_11] : memref<384x128xf32, #tpu.memory_space<vmem>>, vector<1x128xf32>
    %21 = vector.broadcast %20 : vector<1x128xf32> to vector<8x128xf32>
    %22 = arith.addf %19, %21 : vector<8x128xf32>
    %23 = tpu.iota {dimensions = array<i32: 1>} : vector<8x128xi32>
    %c8_i32 = arith.constant 8 : i32
    %24 = vector.broadcast %c8_i32 : i32 to vector<8x128xi32>
    %25 = arith.cmpi sge, %23, %24 : vector<8x128xi32>
    %c16_i32 = arith.constant 16 : i32
    %26 = vector.broadcast %c16_i32 : i32 to vector<8x128xi32>
    %27 = arith.cmpi slt, %23, %26 : vector<8x128xi32>
    %28 = arith.andi %25, %27 : vector<8x128xi1>
    %29 = math.exp %22 : vector<8x128xf32>
    %30 = arith.select %28, %29, %22 : vector<8x128xi1>, vector<8x128xf32>
    %31 = vector.extract_strided_slice %30 {offsets = [0, 0], sizes = [8, 8], strides = [1, 1]} : vector<8x128xf32> to vector<8x8xf32>
    %32 = vector.extract_strided_slice %30 {offsets = [0, 8], sizes = [8, 8], strides = [1, 1]} : vector<8x128xf32> to vector<8x8xf32>
    %33 = arith.mulf %2, %32 : vector<8x8xf32>
    %34 = arith.addf %31, %33 : vector<8x8xf32>
    %c96 = arith.constant 96 : index
    %c0_12 = arith.constant 0 : index
    %35 = vector.load %arg2[%c96, %c0_12] : memref<384x128xf32, #tpu.memory_space<vmem>>, vector<8x128xf32>
    %cst_13 = arith.constant dense<0.000000e+00> : vector<8x128xf32>
    %36 = tpu.matmul %34, %35, %cst_13 {dimension_numbers = #tpu.dot_dimension_numbers<[1], [0], [0], [1], [0, 0, 1, 1], [], []>} : vector<8x8xf32>, vector<8x128xf32>, vector<8x128xf32> -> vector<8x128xf32>
    %c360 = arith.constant 360 : index
    %c0_14 = arith.constant 0 : index
    %37 = vector.load %arg2[%c360, %c0_14] : memref<384x128xf32, #tpu.memory_space<vmem>>, vector<1x128xf32>
    %38 = vector.broadcast %37 : vector<1x128xf32> to vector<8x128xf32>
    %39 = arith.addf %36, %38 : vector<8x128xf32>
    %cst_15 = arith.constant 0.000000e+00 : f32
    %40 = vector.broadcast %cst_15 : f32 to vector<8x128xf32>
    %41 = arith.maximumf %39, %40 : vector<8x128xf32>
    %c104 = arith.constant 104 : index
    %c0_16 = arith.constant 0 : index
    %42 = vector.load %arg2[%c104, %c0_16] : memref<384x128xf32, #tpu.memory_space<vmem>>, vector<128x128xf32>
    %cst_17 = arith.constant dense<0.000000e+00> : vector<8x128xf32>
    %43 = tpu.matmul %41, %42, %cst_17 {dimension_numbers = #tpu.dot_dimension_numbers<[1], [0], [0], [1], [0, 0, 1, 1], [], []>} : vector<8x128xf32>, vector<128x128xf32>, vector<8x128xf32> -> vector<8x128xf32>
    %c368 = arith.constant 368 : index
    %c0_18 = arith.constant 0 : index
    %44 = vector.load %arg2[%c368, %c0_18] : memref<384x128xf32, #tpu.memory_space<vmem>>, vector<1x128xf32>
    %45 = vector.broadcast %44 : vector<1x128xf32> to vector<8x128xf32>
    %46 = arith.addf %43, %45 : vector<8x128xf32>
    %cst_19 = arith.constant 0.000000e+00 : f32
    %47 = vector.broadcast %cst_19 : f32 to vector<8x128xf32>
    %48 = arith.maximumf %46, %47 : vector<8x128xf32>
    %c232 = arith.constant 232 : index
    %c0_20 = arith.constant 0 : index
    %49 = vector.load %arg2[%c232, %c0_20] : memref<384x128xf32, #tpu.memory_space<vmem>>, vector<128x128xf32>
    %cst_21 = arith.constant dense<0.000000e+00> : vector<8x128xf32>
    %50 = tpu.matmul %48, %49, %cst_21 {dimension_numbers = #tpu.dot_dimension_numbers<[1], [0], [0], [1], [0, 0, 1, 1], [], []>} : vector<8x128xf32>, vector<128x128xf32>, vector<8x128xf32> -> vector<8x128xf32>
    %c376 = arith.constant 376 : index
    %c0_22 = arith.constant 0 : index
    %51 = vector.load %arg2[%c376, %c0_22] : memref<384x128xf32, #tpu.memory_space<vmem>>, vector<1x128xf32>
    %52 = vector.broadcast %51 : vector<1x128xf32> to vector<8x128xf32>
    %53 = arith.addf %50, %52 : vector<8x128xf32>
    %c22_i32 = arith.constant 22 : i32
    %54 = vector.broadcast %c22_i32 : i32 to vector<8x128xi32>
    %55 = arith.cmpi sge, %23, %54 : vector<8x128xi32>
    %c28_i32 = arith.constant 28 : i32
    %56 = vector.broadcast %c28_i32 : i32 to vector<8x128xi32>
    %57 = arith.cmpi slt, %23, %56 : vector<8x128xi32>
    %58 = arith.andi %55, %57 : vector<8x128xi1>
    %c30_i32 = arith.constant 30 : i32
    %59 = vector.broadcast %c30_i32 : i32 to vector<8x128xi32>
    %60 = arith.cmpi eq, %23, %59 : vector<8x128xi32>
    %61 = arith.ori %58, %60 : vector<8x128xi1>
    %c32_i32 = arith.constant 32 : i32
    %62 = vector.broadcast %c32_i32 : i32 to vector<8x128xi32>
    %63 = arith.cmpi eq, %23, %62 : vector<8x128xi32>
    %64 = arith.ori %61, %63 : vector<8x128xi1>
    %65 = math.exp %53 : vector<8x128xf32>
    %66 = arith.select %64, %65, %53 : vector<8x128xi1>, vector<8x128xf32>
    %67 = vector.extract_strided_slice %66 {offsets = [0, 31], sizes = [8, 1], strides = [1, 1]} : vector<8x128xf32> to vector<8x1xf32>
    %68 = arith.mulf %67, %3 : vector<8x1xf32>
    %69 = vector.extract_strided_slice %66 {offsets = [0, 29], sizes = [8, 1], strides = [1, 1]} : vector<8x128xf32> to vector<8x1xf32>
    %cst_23 = arith.constant 1.000000e+00 : f32
    %70 = vector.broadcast %cst_23 : f32 to vector<8x1xf32>
    %71 = arith.subf %70, %3 : vector<8x1xf32>
    %72 = arith.mulf %69, %71 : vector<8x1xf32>
    %73 = arith.addf %68, %72 : vector<8x1xf32>
    %74 = vector.extract_strided_slice %66 {offsets = [0, 32], sizes = [8, 1], strides = [1, 1]} : vector<8x128xf32> to vector<8x1xf32>
    %75 = arith.mulf %74, %3 : vector<8x1xf32>
    %76 = vector.extract_strided_slice %66 {offsets = [0, 30], sizes = [8, 1], strides = [1, 1]} : vector<8x128xf32> to vector<8x1xf32>
    %cst_24 = arith.constant 1.000000e+00 : f32
    %77 = vector.broadcast %cst_24 : f32 to vector<8x1xf32>
    %78 = arith.subf %77, %3 : vector<8x1xf32>
    %79 = arith.mulf %76, %78 : vector<8x1xf32>
    %80 = arith.addf %75, %79 : vector<8x1xf32>
    %81 = vector.shape_cast %73 : vector<8x1xf32> to vector<8x1xf32>
    %82 = vector.broadcast %81 : vector<8x1xf32> to vector<8x128xf32>
    %83 = vector.shape_cast %80 : vector<8x1xf32> to vector<8x1xf32>
    %84 = vector.broadcast %83 : vector<8x1xf32> to vector<8x128xf32>
    %c29_i32 = arith.constant 29 : i32
    %85 = vector.broadcast %c29_i32 : i32 to vector<8x128xi32>
    %86 = arith.cmpi eq, %23, %85 : vector<8x128xi32>
    %c30_i32_25 = arith.constant 30 : i32
    %87 = vector.broadcast %c30_i32_25 : i32 to vector<8x128xi32>
    %88 = arith.cmpi eq, %23, %87 : vector<8x128xi32>
    %c30_i32_26 = arith.constant 30 : i32
    %89 = vector.broadcast %c30_i32_26 : i32 to vector<8x128xi32>
    %90 = arith.cmpi sgt, %23, %89 : vector<8x128xi32>
    %cst_27 = arith.constant 0.000000e+00 : f32
    %91 = vector.broadcast %cst_27 : f32 to vector<8x128xf32>
    %92 = arith.select %90, %91, %66 : vector<8x128xi1>, vector<8x128xf32>
    %93 = arith.select %88, %84, %92 : vector<8x128xi1>, vector<8x128xf32>
    %94 = arith.select %86, %82, %93 : vector<8x128xi1>, vector<8x128xf32>
    %95 = arith.addf %30, %94 : vector<8x128xf32>
    %c0_28 = arith.constant 0 : index
    %c0_29 = arith.constant 0 : index
    %96 = vector.load %arg3[%c0_28, %c0_29] : memref<8x128xf32, #tpu.memory_space<vmem>>, vector<8x128xf32>
    tpu.vector_store %arg3[%c0_28, %c0_29], %95 {strides = array<i32>} : memref<8x128xf32, #tpu.memory_space<vmem>>, vector<8x128xf32>,
    return
  }
  func.func @transform_0(%arg0: i32) -> (i32, i32) {
    %c0_i32 = arith.constant 0 : i32
    %c0_i32_0 = arith.constant 0 : i32
    return %arg0, %c0_i32 : i32, i32
  }
  func.func @transform_1(%arg0: i32) -> (i32, i32) {
    %c0_i32 = arith.constant 0 : i32
    %c0_i32_0 = arith.constant 0 : i32
    %c0_i32_1 = arith.constant 0 : i32
    return %c0_i32, %c0_i32_0 : i32, i32
  }
  func.func @transform_2(%arg0: i32) -> (i32, i32) {
    %c0_i32 = arith.constant 0 : i32
    %c0_i32_0 = arith.constant 0 : i32
    return %arg0, %c0_i32 : i32, i32
  }
}

</mosaic_0001>

<bundles_post_ra>
// kernel: tpu_custom_call.1
= control target key start
LH: loop header
LB: loop body
LE: loop exit
PB: predicated region body
PF: predicated region fallthrough
CT: control target
= control target key end

     0   :  { %7 = vsyncpa [#allocation3], 0  ;;  %s495_s0 = inlined_call_operand.hbm [shape: f32[8,16], index: 0, kind: input, shape index: {}]   ;;  %s496_s1 = inlined_call_operand.hbm [shape: f32[384,128], index: 1, kind: input, shape index: {}]   ;;  %s497_s2 = inlined_call_operand.hbm [shape: f32[8,128], index: 2, kind: output, shape index: {}]  }
   0x1   :  { %8 = vsyncpa [#allocation6], 0 }
   0x2   :  { %9 = vsyncpa [#allocation4], 0  ;;  %s15_s11 = sshll.u32 %s495_s0, 4  ;;  %s430_s12 = smov [#allocation2]   ;;  %s16_s11 = int_to_ptr.hbm [resolvable:$true] %s15_s11 }
   0x3   :  { %s17_s13 = sshll.u32 %s430_s12, 4  ;;  %s25_s16 = sshll.u32 %s496_s1, 4  ;;  %s18_s13 = int_to_ptr.vmem [resolvable:$true] %s17_s13  ;;  %s26_s16 = int_to_ptr.hbm [resolvable:$true] %s25_s16 }
   0x4   :  { %20 = dma.hbm_to_vmem [thread:$0]  %s16_s11, 128, %s18_s13, [#allocation3]  }
   0x5   :  { %s431_s17 = smov [#allocation5]   ;;  %s432_s19 = smov 128  }
   0x6   :  { %s27_s18 = sshll.u32 %s431_s17, 4  ;;  %s433_s20 = smov 8   ;;  %s28_s18 = int_to_ptr.vmem [resolvable:$true] %s27_s18 }
   0x7   :  { %33 = dma.hbm_to_vmem [thread:$0]  %s26_s16, 6144, %s28_s18, [#allocation6], %s432_s19, %s432_s19, %s433_s20  }
   0x8   :  { %424 = dma.done.wait [#allocation3], 128  }
   0x9   :  { %425 = vsyncadd [#allocation3], 4294967168 }
   0xa   :  { %426 = dma.done.wait [#allocation6], 6144  }
   0xb   :  { %427 = vsyncadd [#allocation6], 4294961152  ;;  %vm46_vm0 = vcmask 64512   ;;  %v43_v0 = vld [vmem:[#allocation5] sm:$0xff]  ;;  %v464_v1 = vld [vmem:[#allocation2] sm:$0xff]  ;;  %vm77_vm1 = vcmask 261120   ;;  %v131_v20 = vlaneseq }
   0xc   :  { %v74_v2 = vld [vmem:[#allocation5 + $0x20] sm:$0xff]  ;;  %65 = vmatpush.msra.mxu1 %v43_v0  ;;  %v73_v3 = vld [vmem:[#allocation5 + $0x18] sm:$0xff]  ;;  %v72_v4 = vld [vmem:[#allocation5 + $0x10] sm:$0xff]  ;;  %s434_s0 = smov 120   ;;  %s435_s1 = smov 27  }
   0xd   :  { %322 = vmatmul.msk.f32.vlgmr.msra.gmra.mxu1 %vm46_vm0, %v464_v1  ;;  %v71_v5 = vld [vmem:[#allocation5 + $0x8] sm:$0xff]  ;;  %v105_v6 = vld [vmem:[#allocation5 + $0x40] sm:$0xff]  ;;  %v104_v11 = vld [vmem:[#allocation5 + $0x38] sm:$0xff]  ;;  %v468_v23 = vand.u32 127, %v131_v20  ;;  %259 = vrot.lane.b32.xlu2 %v464_v1, %s435_s1  ;;  %s436_s21 = smov 25   ;;  %s437_s22 = smov 26  }
   0xe   :  { %93 = vmatpush.msrb.mxu1 %v74_v2  ;;  %123 = vmatpush.msra.mxu2 %v105_v6  ;;  %v342_v7 = vld [vmem:[#allocation5 + $0x48] ss:$0 sm:$0xff]  ;;  %v103_v12 = vld [vmem:[#allocation5 + $0x30] sm:$0xff]  ;;  %v145_v18 = vld [vmem:[#allocation5 + $0x60] sm:$0xff]  ;;  %s438_s23 = smov 28   ;;  %s439_s24 = smov 2  }
   0xf   :  { %v102_v13 = vld [vmem:[#allocation5 + $0x28] sm:$0xff]  ;;  %v343_v14 = vld [vmem:[#allocation5 + $0x50] ss:$0 sm:$0xff]  ;;  %v344_v19 = vld [vmem:[#allocation5 + $0x58] ss:$0 sm:$0xff]  ;;  %vm133_vm2 = vcmp.ge.s32.totalorder %v468_v23, 8 }
  0x10   :  { %94 = vmatpush.msrb.mxu1 %v73_v3  ;;  %124 = vmatpush.msra.mxu2 %v104_v11  ;;  %vm134_vm3 = vcmp.lt.s32.totalorder %v468_v23, 16  ;;  %v187_v28 = vld [vmem:[#allocation5 + $0xe0] sm:$0xff]  ;;  %v186_v29 = vld [vmem:[#allocation5 + $0xd8] sm:$0xff]  ;;  %v185_v30 = vld [vmem:[#allocation5 + $0xd0] sm:$0xff]  ;;  %v263_v3 = vsub.f32 1.0, %v464_v1  ;;  %vm249_vm5 = vcmp.ge.s32.totalorder %v468_v23, 22 }
  0x11   :  { %vm135_vm4 = vmand %vm133_vm2, %vm134_vm3  ;;  %190 = vmatpush.msra.mxu0 %v187_v28  ;;  %v184_v31 = vld [vmem:[#allocation5 + $0xc8] sm:$0xff]  ;;  %v183_v32 = vld [vmem:[#allocation5 + $0xc0] sm:$0xff]  ;;  %vm250_vm6 = vcmp.lt.s32.totalorder %v468_v23, 28  ;;  %vm252_vm8 = vcmp.eq.s32.totalorder %v468_v23, 30  ;;  %vm254_vm10 = vcmp.eq.s32.totalorder %v468_v23, 32  ;;  %vm298_vm12 = vcmp.gt.s32.totalorder %v468_v23, 30 }
  0x12   :  { %95 = vmatpush.msrb.mxu1 %v72_v4  ;;  %125 = vmatpush.msra.mxu2 %v103_v12  ;;  %v182_v33 = vld [vmem:[#allocation5 + $0xb8] sm:$0xff]  ;;  %v181_v34 = vld [vmem:[#allocation5 + $0xb0] sm:$0xff]  ;;  %v180_v35 = vld [vmem:[#allocation5 + $0xa8] sm:$0xff]  ;;  %vm297_vm13 = vcmp.eq.s32.totalorder %v468_v23, 29  ;;  %s442_s25 = smov [#allocation7]   ;;  %s311_s29 = sshll.u32 %s497_s2, 4  ;;  %s312_s29 = int_to_ptr.hbm [resolvable:$true] %s311_s29 }
  0x13   :  { %191 = vmatpush.msra.mxu0 %v186_v29  ;;  %v179_v36 = vld [vmem:[#allocation5 + $0xa0] sm:$0xff]  ;;  %v178_v37 = vld [vmem:[#allocation5 + $0x98] sm:$0xff]  ;;  %v177_v38 = vld [vmem:[#allocation5 + $0x90] sm:$0xff]  ;;  %265 = vrot.lane.b32.xlu1 %v263_v3, %s436_s21  ;;  %s309_s26 = sshll.u32 %s442_s25, 4  ;;  %s310_s26 = int_to_ptr.vmem [resolvable:$true] %s309_s26 }
  0x14   :  { %96 = vmatpush.msrb.mxu1 %v71_v5  ;;  %126 = vmatpush.msra.mxu2 %v102_v13  ;;  %v176_v39 = vld [vmem:[#allocation5 + $0x88] sm:$0xff]  ;;  %v175_v40 = vld [vmem:[#allocation5 + $0x80] sm:$0xff]  ;;  %v174_v43 = vld [vmem:[#allocation5 + $0x78] sm:$0xff] }
  0x15   :  { %192 = vmatpush.msra.mxu0 %v185_v30  ;;  %v173_v44 = vld [vmem:[#allocation5 + $0x70] sm:$0xff]  ;;  %v172_v45 = vld [vmem:[#allocation5 + $0x68] sm:$0xff]  ;;  %v226_v46 = vld [vmem:[#allocation5 + $0x160] sm:$0xff] }
  0x16   :  { %166 = vmatpush.msrb.mxu2 %v145_v18  ;;  %v225_v47 = vld [vmem:[#allocation5 + $0x158] sm:$0xff]  ;;  %229 = vmatpush.msra.mxu3 %v226_v46  ;;  %v224_v48 = vld [vmem:[#allocation5 + $0x150] sm:$0xff]  ;;  %v223_v49 = vld [vmem:[#allocation5 + $0x148] sm:$0xff] }
  0x17   :  { %193 = vmatpush.msra.mxu0 %v184_v31  ;;  %v222_v50 = vld [vmem:[#allocation5 + $0x140] sm:$0xff]  ;;  %v221_v51 = vld [vmem:[#allocation5 + $0x138] sm:$0xff]  ;;  %v220_v52 = vld [vmem:[#allocation5 + $0x130] sm:$0xff] }
  0x18   :  { %230 = vmatpush.msra.mxu3 %v225_v47  ;;  %v219_v53 = vld [vmem:[#allocation5 + $0x128] sm:$0xff]  ;;  %v218_v54 = vld [vmem:[#allocation5 + $0x120] sm:$0xff]  ;;  %v217_v55 = vld [vmem:[#allocation5 + $0x118] sm:$0xff] }
  0x19   :  { %194 = vmatpush.msra.mxu0 %v183_v32  ;;  %v216_v56 = vld [vmem:[#allocation5 + $0x110] sm:$0xff]  ;;  %v215_v57 = vld [vmem:[#allocation5 + $0x108] sm:$0xff]  ;;  %v214_v58 = vld [vmem:[#allocation5 + $0x100] sm:$0xff] }
  0x1a   :  { %231 = vmatpush.msra.mxu3 %v224_v48  ;;  %v345_v59 = vld [vmem:[#allocation5 + $0x168] ss:$0 sm:$0xff]  ;;  %v213_v63 = vld [vmem:[#allocation5 + $0xf8] sm:$0xff]  ;;  %v212_v0 = vld [vmem:[#allocation5 + $0xf0] sm:$0xff] }
  0x1b   :  { %195 = vmatpush.msra.mxu0 %v182_v33  ;;  %v211_v2 = vld [vmem:[#allocation5 + $0xe8] sm:$0xff]  ;;  %274 = vrot.lane.b32.xlu1 %v464_v1, %s438_s23  ;;  %v346_v4 = vld [vmem:[#allocation5 + $0x170] ss:$0 sm:$0xff]  ;;  %vm251_vm7 = vmand %vm249_vm5, %vm250_vm6 }
  0x1c   :  { %232 = vmatpush.msra.mxu3 %v223_v49  ;;  %vm253_vm9 = vmor %vm251_vm7, %vm252_vm8 }
  0x1d   :  { %196 = vmatpush.msra.mxu0 %v181_v34  ;;  %vm255_vm11 = vmor %vm253_vm9, %vm254_vm10 }
  0x1e   :  { %233 = vmatpush.msra.mxu3 %v222_v50 }
  0x1f   :  { %197 = vmatpush.msra.mxu0 %v180_v35 }
  0x20   :  { %234 = vmatpush.msra.mxu3 %v221_v51 }
  0x21   :  { %198 = vmatpush.msra.mxu0 %v179_v36 }
  0x22   :  { %235 = vmatpush.msra.mxu3 %v220_v52 }
  0x23   :  { %199 = vmatpush.msra.mxu0 %v178_v37 }
  0x24   :  { %236 = vmatpush.msra.mxu3 %v219_v53 }
  0x25   :  { %200 = vmatpush.msra.mxu0 %v177_v38 }
  0x26   :  { %237 = vmatpush.msra.mxu3 %v218_v54 }
  0x27   :  { %201 = vmatpush.msra.mxu0 %v176_v39 }
  0x28   :  { %238 = vmatpush.msra.mxu3 %v217_v55 }
  0x29   :  { %202 = vmatpush.msra.mxu0 %v175_v40 }
  0x2a   :  { %239 = vmatpush.msra.mxu3 %v216_v56 }
  0x2b   :  { %203 = vmatpush.msra.mxu0 %v174_v43 }
  0x2c   :  { %240 = vmatpush.msra.mxu3 %v215_v57 }
  0x2d   :  { %204 = vmatpush.msra.mxu0 %v173_v44 }
  0x2e   :  { %241 = vmatpush.msra.mxu3 %v214_v58 }
  0x2f   :  { %205 = vmatpush.msra.mxu0 %v172_v45 }
  0x30   :  { %242 = vmatpush.msra.mxu3 %v213_v63 }
  0x32   :  { %243 = vmatpush.msra.mxu3 %v212_v0 }
  0x34   :  { %244 = vmatpush.msra.mxu3 %v211_v2 }
  0x67   :  { %v260_v18 = vpop.permute.xlu2 %259 }
  0x8a   :  { %v67_v8 = vpop.f32.mrf.mxu1 }
  0x8b   :  { %v68_v9 = vadd.f32 %v342_v7, %v67_v8  ;;  %v347_v8 = vld [vmem:[#allocation5 + $0x178] ss:$0 sm:$0xff] }
  0x8d   :  { %v70_v10 = vmax.f32 %v68_v9, 0.0 }
  0x8f   :  { %323 = vmatmul.msk.f32.vlgmr.msrb.gmra.mxu1 %vm77_vm1, %v70_v10 }
 0x10c   :  { %v98_v15 = vpop.f32.mrf.mxu1 }
 0x10d   :  { %v99_v16 = vadd.f32 %v343_v14, %v98_v15  ;;  %v266_v14 = vpop.permute.xlu1 %265 }
 0x10f   :  { %v101_v17 = vmax.f32 %v99_v16, 0.0 }
 0x111   :  { %324 = vmatmul.msk.f32.vlgmr.msra.gmra.mxu2 %vm77_vm1, %v101_v17  ;;  %v440_v17 = vmov 32  }
 0x112   :  { %339 = vset.pattern.permute.xlu1 %v440_v17  ;;  %341 = vset.pattern.permute.xlu0 %v440_v17 }
 0x115   :  { %v275_v20 = vpop.permute.xlu1 %274 }
 0x194   :  { %v128_v21 = vpop.f32.mrf.mxu2 }
 0x195   :  { %v129_v22 = vadd.f32 %v344_v19, %v128_v21  ;;  %v441_v19 = vmov 31  }
 0x196   :  { %340 = vset.pattern.permute.xlu2 %v441_v19 }
 0x197   :  { %v136_v24 = vmul.f32 1.442695, %v129_v22 }
 0x199   :  { %348 = vpow2.f32 %v136_v24 }
 0x19f   :  { %v349_v25 = vpop.eup %348 }
 0x1a0   :  { %v472_v26 = vsel %vm135_vm4, %v349_v25, %v129_v22 }
 0x1a1   :  { %v139_v27 = vmul.f32 %v472_v26, %v464_v1 }
 0x1a3   :  { %141 = vrot.lane.b32.xlu0 %v139_v27, %s434_s0 }
 0x1ab   :  { %278 = vrot.lane.b32.xlu0 %v263_v3, %s437_s22 }
 0x215   :  { %v142_v41 = vpop.permute.xlu0 %141 }
 0x216   :  { %v144_v42 = vadd.f32 %v142_v41, %v472_v26 }
 0x218   :  { %325 = vmatmul.msk.f32.vlgmr.msrb.gmra.mxu2 %vm46_vm0, %v144_v42 }
 0x21d   :  { %v279_v1 = vpop.permute.xlu0 %278 }
 0x29b   :  { %v168_v60 = vpop.f32.mrf.mxu2 }
 0x29c   :  { %v169_v61 = vadd.f32 %v345_v59, %v168_v60 }
 0x29e   :  { %v171_v62 = vmax.f32 %v169_v61, 0.0 }
 0x2a0   :  { %206 = vmatmul.f32.vlgmr.msra.gmra.mxu0 %v171_v62 }
 0x31d   :  { %v207_v5 = vpop.f32.mrf.mxu0 }
 0x31e   :  { %v208_v6 = vadd.f32 %v346_v4, %v207_v5 }
 0x320   :  { %v210_v7 = vmax.f32 %v208_v6, 0.0 }
 0x322   :  { %245 = vmatmul.f32.vlgmr.msra.gmra.mxu3 %v210_v7 }
 0x3a5   :  { %v246_v9 = vpop.f32.mrf.mxu3 }
 0x3a6   :  { %v247_v10 = vadd.f32 %v347_v8, %v246_v9 }
 0x3a8   :  { %v256_v11 = vmul.f32 1.442695, %v247_v10 }
 0x3aa   :  { %350 = vpow2.f32 %v256_v11 }
 0x3b0   :  { %v351_v12 = vpop.eup %350 }
 0x3b1   :  { %v258_v13 = vsel %vm255_vm11, %v351_v12, %v247_v10 }
 0x3b2   :  { %v268_v15 = vmul.f32 %v266_v14, %v258_v13  ;;  %v281_v16 = vmul.f32 %v279_v1, %v258_v13  ;;  %v277_v21 = vmul.f32 %v275_v20, %v258_v13  ;;  %v262_v25 = vmul.f32 %v260_v18, %v258_v13 }
 0x3b3   :  { %v299_v29 = vsel %vm298_vm12, 0.0, %v258_v13 }
 0x3b4   :  { %270 = vrot.lane.b32.xlu0 %v268_v15, %s439_s24  ;;  %283 = vrot.lane.b32.xlu2 %v281_v16, %s439_s24 }
 0x40e   :  { %v284_v22 = vpop.permute.xlu2 %283 }
 0x40f   :  { %v286_v24 = vadd.f32 %v284_v22, %v277_v21 }
 0x411   :  { %294 = vperm.xlu1 %339, %v286_v24  }
 0x426   :  { %v271_v27 = vpop.permute.xlu0 %270 }
 0x427   :  { %v273_v28 = vadd.f32 %v271_v27, %v262_v25 }
 0x429   :  { %289 = vperm.xlu2 %340, %v273_v28  }
 0x483   :  { %v295_v30 = vpop.permute.xlu1 %294  ;;  %v290_v31 = vpop.permute.xlu2 %289 }
 0x484   :  { %v300_v32 = vsel %vm252_vm8, %v295_v30, %v299_v29 }
 0x485   :  { %v301_v33 = vsel %vm297_vm13, %v290_v31, %v300_v32 }
 0x486   :  { %v302_v34 = vadd.f32 %v301_v33, %v472_v26 }
 0x488   :  { %303 = vst [vmem:[#allocation7] sm:$0xff] %v302_v34 }
 0x489   :  { %314 = dma.vmem_to_hbm [thread:$0]  %s310_s26, 128, %s312_s29, [#allocation4]  }
 0x48a   :  { %428 = dma.done.wait [#allocation4], 128  }
 0x48b   :  { %429 = vsyncadd [#allocation4], 4294967168 }
 0x48c   :  { %319 = vsyncpa [#allocation3], 1 }
 0x48d   :  { %320 = vsyncpa [#allocation6], 1 }
 0x48e   :  { %321 = vsyncpa [#allocation4], 1 }

</bundles_post_ra>
